<compile_context>
chip_gen: v6e
topology: v6e:2x2x1
jax: 0.10.0
libtpu: 0.0.40
codegen_flags: <defaults>
</compile_context>

<pallas_src>
import jax
import jax.numpy as jnp
from jax.experimental import pallas as pl
from jax.experimental.pallas import tpu as pltpu


# ---------------------------------------------------------------------------
# kernel: one strided HBM->HBM DMA per input into its column window
# ---------------------------------------------------------------------------
def _concat_dma_kernel(*refs):
    n = len(refs) - 2                      # inputs..., out, dma_sems
    in_refs = refs[:n]
    out_ref = refs[n]
    sem = refs[n + 1]

    copies = []
    off = 0
    for i, r in enumerate(in_refs):
        w = r.shape[1]                     # static python int
        cp = pltpu.make_async_copy(r, out_ref.at[:, off:off + w], sem.at[i])
        cp.start()                         # issue all DMAs up front
        copies.append(cp)
        off += w
    for cp in copies:                      # then drain them all
        cp.wait()


# ---------------------------------------------------------------------------
# wrapper
# ---------------------------------------------------------------------------
def concat(xs, dimension=1):
    """Equivalent of torch.cat(xs, dim=dimension) for same-rank arrays."""
    xs = [jnp.asarray(x) for x in xs]
    if len(xs) == 1:
        return xs[0]

    ndim = xs[0].ndim
    d = dimension % ndim
    out_dtype = jnp.result_type(*[x.dtype for x in xs])

    base = xs[0].shape
    outer = 1
    for s in base[:d]:
        outer *= s
    inner = 1
    for s in base[d + 1:]:
        inner *= s

    widths = [int(x.shape[d]) * inner for x in xs]
    total_w = sum(widths)
    out_nd_shape = base[:d] + (sum(x.shape[d] for x in xs),) + base[d + 1:]
    itemsize = jnp.dtype(out_dtype).itemsize

    # Small-problem fallback: narrow (sub-128-lane) or tiny outputs are better
    # served by XLA's native concat than a kernel launch.
    if total_w < 128 or outer * total_w * itemsize < 16 * 1024:
        return jnp.concatenate([x.astype(out_dtype) for x in xs], axis=d)

    # Flatten to (outer, width) views; concat along dim d is then a per-row
    # contiguous slab copy into a static column window of the output.
    # The reshape is metadata-only for contiguous row-major arrays.
    xs2d = [
        (x if x.dtype == out_dtype else x.astype(out_dtype)).reshape(outer, w)
        for x, w in zip(xs, widths)
    ]
    n = len(xs2d)

    out2d = pl.pallas_call(
        _concat_dma_kernel,
        out_shape=jax.ShapeDtypeStruct((outer, total_w), out_dtype),
        in_specs=[pl.BlockSpec(memory_space=pl.ANY) for _ in range(n)],
        out_specs=pl.BlockSpec(memory_space=pl.ANY),
        scratch_shapes=[pltpu.SemaphoreType.DMA((n,))],
    )(*xs2d)

    return out2d.reshape(out_nd_shape)


# ---------------------------------------------------------------------------
# self-test
# ---------------------------------------------------------------------------
if __name__ == "__main__":
    key = jax.random.PRNGKey(0)
    k1, k2, k3, k4, k5, k6, k7 = jax.random.split(key, 7)

    # Default YOLOv5 usage: concat feature maps along channels (dim=1, NCHW).
    xs = [
        jax.random.normal(k1, (2, 4, 16, 16), jnp.float32),
        jax.random.normal(k2, (2, 4, 16, 16), jnp.float32),
        jax.random.normal(k3, (2, 8, 16, 16), jnp.float32),
    ]
    out = jax.block_until_ready(concat(xs, dimension=1))
    ref = jnp.concatenate(xs, axis=1)
    assert out.shape == ref.shape
    assert jnp.array_equal(out, ref), float(jnp.max(jnp.abs(out - ref)))

    # 20x20 feature maps with odd channel counts: H*W = 400 and the channel
    # offsets are NOT multiples of 128 -> exercises byte-addressed DMA path.
    zs = [
        jax.random.normal(k4, (2, 3, 20, 20), jnp.float32),
        jax.random.normal(k5, (2, 5, 20, 20), jnp.float32),
    ]
    out3 = jax.block_until_ready(concat(zs, dimension=1))
    ref3 = jnp.concatenate(zs, axis=1)
    assert out3.shape == ref3.shape
    assert jnp.array_equal(out3, ref3)

    # Non-default concat dimension (last axis, narrow width) -> fallback path.
    ys = [
        jax.random.normal(k6, (2, 4, 16, 16), jnp.float32),
        jax.random.normal(k7, (2, 4, 16, 8), jnp.float32),
    ]
    out2 = jax.block_until_ready(concat(ys, dimension=-1))
    ref2 = jnp.concatenate(ys, axis=-1)
    assert out2.shape == ref2.shape
    assert jnp.array_equal(out2, ref2)

    print("KERNEL_OK")
</pallas_src>

<mosaic_0001>
module attributes {stable_mosaic.version = 11 : i64} {
  func.func @_concat_dma_kernel(%arg0: memref<2x1024xf32, #tpu.memory_space<any>>, %arg1: memref<2x1024xf32, #tpu.memory_space<any>>, %arg2: memref<2x2048xf32, #tpu.memory_space<any>>, %arg3: memref<2x4096xf32, #tpu.memory_space<any>>, %arg4: memref<3x!tpu.dma_semaphore, #tpu.memory_space<semaphore_mem>>) attributes {dimension_semantics = [], scalar_prefetch = 0 : i64, scratch_operands = 1 : i64, tpu.core_type = #tpu.core_type<tc>} {
    %c0_i32 = arith.constant 0 : i32
    %c0_i32_0 = arith.constant 0 : i32
    %c0_i32_1 = arith.constant 0 : i32
    %0 = tpu.memref_slice %arg3[%c0_i32_0, %c0_i32_1] : memref<2x4096xf32, #tpu.memory_space<any>> -> memref<2x1024xf32, #tpu.memory_space<any>>
    %1 = tpu.memref_slice %arg4[%c0_i32] : memref<3x!tpu.dma_semaphore, #tpu.memory_space<semaphore_mem>> -> memref<1x!tpu.dma_semaphore, #tpu.memory_space<semaphore_mem>>
    %2 = tpu.memref_squeeze %1 : memref<1x!tpu.dma_semaphore, #tpu.memory_space<semaphore_mem>> -> memref<!tpu.dma_semaphore, #tpu.memory_space<semaphore_mem>>
    tpu.enqueue_dma source(%arg0 : memref<2x1024xf32, #tpu.memory_space<any>>) target(%0 : memref<2x1024xf32, #tpu.memory_space<any>>) target_semaphore(%2 : memref<!tpu.dma_semaphore, #tpu.memory_space<semaphore_mem>>)
    %c1_i32 = arith.constant 1 : i32
    %c0_i32_2 = arith.constant 0 : i32
    %c1024_i32 = arith.constant 1024 : i32
    %3 = tpu.memref_slice %arg3[%c0_i32_2, %c1024_i32] : memref<2x4096xf32, #tpu.memory_space<any>> -> memref<2x1024xf32, #tpu.memory_space<any>>
    %4 = tpu.memref_slice %arg4[%c1_i32] : memref<3x!tpu.dma_semaphore, #tpu.memory_space<semaphore_mem>> -> memref<1x!tpu.dma_semaphore, #tpu.memory_space<semaphore_mem>>
    %5 = tpu.memref_squeeze %4 : memref<1x!tpu.dma_semaphore, #tpu.memory_space<semaphore_mem>> -> memref<!tpu.dma_semaphore, #tpu.memory_space<semaphore_mem>>
    tpu.enqueue_dma source(%arg1 : memref<2x1024xf32, #tpu.memory_space<any>>) target(%3 : memref<2x1024xf32, #tpu.memory_space<any>>) target_semaphore(%5 : memref<!tpu.dma_semaphore, #tpu.memory_space<semaphore_mem>>)
    %c2_i32 = arith.constant 2 : i32
    %c0_i32_3 = arith.constant 0 : i32
    %c2048_i32 = arith.constant 2048 : i32
    %6 = tpu.memref_slice %arg3[%c0_i32_3, %c2048_i32] : memref<2x4096xf32, #tpu.memory_space<any>> -> memref<2x2048xf32, #tpu.memory_space<any>>
    %7 = tpu.memref_slice %arg4[%c2_i32] : memref<3x!tpu.dma_semaphore, #tpu.memory_space<semaphore_mem>> -> memref<1x!tpu.dma_semaphore, #tpu.memory_space<semaphore_mem>>
    %8 = tpu.memref_squeeze %7 : memref<1x!tpu.dma_semaphore, #tpu.memory_space<semaphore_mem>> -> memref<!tpu.dma_semaphore, #tpu.memory_space<semaphore_mem>>
    tpu.enqueue_dma source(%arg2 : memref<2x2048xf32, #tpu.memory_space<any>>) target(%6 : memref<2x2048xf32, #tpu.memory_space<any>>) target_semaphore(%8 : memref<!tpu.dma_semaphore, #tpu.memory_space<semaphore_mem>>)
    %c0_i32_4 = arith.constant 0 : i32
    %c0_i32_5 = arith.constant 0 : i32
    %c0_i32_6 = arith.constant 0 : i32
    %9 = tpu.memref_slice %arg3[%c0_i32_5, %c0_i32_6] : memref<2x4096xf32, #tpu.memory_space<any>> -> memref<2x1024xf32, #tpu.memory_space<any>>
    %10 = tpu.memref_slice %arg4[%c0_i32_4] : memref<3x!tpu.dma_semaphore, #tpu.memory_space<semaphore_mem>> -> memref<1x!tpu.dma_semaphore, #tpu.memory_space<semaphore_mem>>
    %11 = tpu.memref_squeeze %10 : memref<1x!tpu.dma_semaphore, #tpu.memory_space<semaphore_mem>> -> memref<!tpu.dma_semaphore, #tpu.memory_space<semaphore_mem>>
    tpu.wait_dma2 semaphore(%11 : memref<!tpu.dma_semaphore, #tpu.memory_space<semaphore_mem>>) src(%arg0 : memref<2x1024xf32, #tpu.memory_space<any>>) dst(%9 : memref<2x1024xf32, #tpu.memory_space<any>>)
    %c1_i32_7 = arith.constant 1 : i32
    %c0_i32_8 = arith.constant 0 : i32
    %c1024_i32_9 = arith.constant 1024 : i32
    %12 = tpu.memref_slice %arg3[%c0_i32_8, %c1024_i32_9] : memref<2x4096xf32, #tpu.memory_space<any>> -> memref<2x1024xf32, #tpu.memory_space<any>>
    %13 = tpu.memref_slice %arg4[%c1_i32_7] : memref<3x!tpu.dma_semaphore, #tpu.memory_space<semaphore_mem>> -> memref<1x!tpu.dma_semaphore, #tpu.memory_space<semaphore_mem>>
    %14 = tpu.memref_squeeze %13 : memref<1x!tpu.dma_semaphore, #tpu.memory_space<semaphore_mem>> -> memref<!tpu.dma_semaphore, #tpu.memory_space<semaphore_mem>>
    tpu.wait_dma2 semaphore(%14 : memref<!tpu.dma_semaphore, #tpu.memory_space<semaphore_mem>>) src(%arg1 : memref<2x1024xf32, #tpu.memory_space<any>>) dst(%12 : memref<2x1024xf32, #tpu.memory_space<any>>)
    %c2_i32_10 = arith.constant 2 : i32
    %c0_i32_11 = arith.constant 0 : i32
    %c2048_i32_12 = arith.constant 2048 : i32
    %15 = tpu.memref_slice %arg3[%c0_i32_11, %c2048_i32_12] : memref<2x4096xf32, #tpu.memory_space<any>> -> memref<2x2048xf32, #tpu.memory_space<any>>
    %16 = tpu.memref_slice %arg4[%c2_i32_10] : memref<3x!tpu.dma_semaphore, #tpu.memory_space<semaphore_mem>> -> memref<1x!tpu.dma_semaphore, #tpu.memory_space<semaphore_mem>>
    %17 = tpu.memref_squeeze %16 : memref<1x!tpu.dma_semaphore, #tpu.memory_space<semaphore_mem>> -> memref<!tpu.dma_semaphore, #tpu.memory_space<semaphore_mem>>
    tpu.wait_dma2 semaphore(%17 : memref<!tpu.dma_semaphore, #tpu.memory_space<semaphore_mem>>) src(%arg2 : memref<2x2048xf32, #tpu.memory_space<any>>) dst(%15 : memref<2x2048xf32, #tpu.memory_space<any>>)
    return
  }
}

</mosaic_0001>

<bundles_post_ra>
// kernel: tpu_custom_call.1
= control target key start
LH: loop header
LB: loop body
LE: loop exit
PB: predicated region body
PF: predicated region fallthrough
CT: control target
= control target key end

     0   :  { %s76_s15 = smov [#allocation2]   ;;  %s77_s16 = smov 131072   ;;  %s119_s0 = inlined_call_operand.hbm [shape: f32[2,1024], index: 0, kind: input, shape index: {}]   ;;  %s120_s3 = inlined_call_operand.hbm [shape: f32[2,4096], index: 3, kind: output, shape index: {}]   ;;  %s121_s1 = inlined_call_operand.hbm [shape: f32[2,1024], index: 1, kind: input, shape index: {}]   ;;  %s122_s2 = inlined_call_operand.hbm [shape: f32[2,2048], index: 2, kind: input, shape index: {}]  }
   0x1   :  { %s15_s14 = scalar_lea.hbm %s120_s3, 256  ;;  %s78_s17 = smov 0  }
   0x2   :  { %14 = dma.general %s119_s0, 256, %s120_s3, %s76_s15, %s77_s16, [#allocation4], %s78_s17, 0  }
   0x3   :  { %s24_s24 = scalar_lea.hbm %s120_s3, 512  ;;  %s79_s25 = smov [#allocation2 + $0x1]  }
   0x4   :  { %23 = dma.general %s121_s1, 256, %s15_s14, %s79_s25, %s77_s16, [#allocation6], %s78_s17, 0  }
   0x5   :  { %s80_s28 = smov [#allocation2 + $0x2]  }
   0x6   :  { %32 = dma.general %s122_s2, 512, %s24_s24, %s80_s28, %s77_s16, [#allocation8], %s78_s17, 0  }
   0x7   :  { %70 = dma.done.wait [#allocation2], 256 }
   0x8   :  { %71 = vsyncadd [#allocation2], 4294967040 }
   0x9   :  { %72 = dma.done.wait [#allocation2 + $0x1], 256 }
   0xa   :  { %73 = vsyncadd [#allocation2 + $0x1], 4294967040 }
   0xb   :  { %74 = dma.done.wait [#allocation2 + $0x2], 512 }
   0xc   :  { %75 = vsyncadd [#allocation2 + $0x2], 4294966784 }
   0xd   :  { %42 = vsyncmov [#allocation2] }
  0x10   :  { %s43_s0 = vpop.sfrf %42 }
  0x11   :  { %p62_p0 = scmp.ne.s32.totalorder %s43_s0, 0 }
  0x13   :  { %47 = shalt.err (%p62_p0)  }
  0x14   :  { %49 = vsyncmov [#allocation2 + $0x1] }
  0x17   :  { %s50_s3 = vpop.sfrf %49 }
  0x18   :  { %p63_p1 = scmp.ne.s32.totalorder %s50_s3, 0 }
  0x1a   :  { %54 = shalt.err (%p63_p1)  }
  0x1b   :  { %56 = vsyncmov [#allocation2 + $0x2] }
  0x1e   :  { %s57_s1 = vpop.sfrf %56 }
  0x1f   :  { %p64_p2 = scmp.ne.s32.totalorder %s57_s1, 0 }
  0x21   :  { %61 = shalt.err (%p64_p2)  }

</bundles_post_ra>
